<compile_context>
chip_gen: v6e
topology: v6e:2x2x1
jax: 0.10.0
libtpu: 0.0.40
codegen_flags: <defaults>
</compile_context>

<pallas_src>
import functools

import jax
import jax.numpy as jnp
from jax.experimental import pallas as pl
from jax.experimental.pallas import tpu as pltpu


def _circle_loss_kernel(inputs_ref, targets_ref, out_ref, *, scale, margin,
                        n_valid, tile_rows, stabilize):
    x = inputs_ref[...].astype(jnp.float32)            # (TN, C)
    t = targets_ref[...]                                # (TN, 1) int32

    # one-hot via lane iota compare (VPU compare, no gather)
    col = jax.lax.broadcasted_iota(jnp.int32, x.shape, 1)
    is_tgt = col == t                                    # (TN, C) bool

    # Fused per-element chain: relu factors, one select, scale folded once.
    p = jnp.maximum(1.0 + margin - x, 0.0)              # pos relu
    q = jnp.maximum(x + margin, 0.0)                     # neg relu
    scores = scale * jnp.where(is_tgt,
                               (x - (1.0 - margin)) * p,
                               (x - margin) * q)

    # cross-entropy with integer targets: logsumexp(scores) - scores[target]
    if stabilize:
        row_max = jnp.max(scores, axis=-1, keepdims=True)
        lse = row_max + jnp.log(jnp.sum(jnp.exp(scores - row_max), axis=-1,
                                        keepdims=True))
    else:
        # Caller guarantees |scores| is small (e.g. cosine inputs in [-1,1]
        # give |scores| <= s*(1+m)^2); skips one XLU reduce pass + subtract.
        lse = jnp.log(jnp.sum(jnp.exp(scores), axis=-1, keepdims=True))

    tgt_score = jnp.sum(jnp.where(is_tgt, scores, 0.0), axis=-1, keepdims=True)
    per_example = lse - tgt_score                        # (TN, 1)

    # Mask padded / out-of-bounds rows of the ragged last tile (the OOB
    # region of the last block holds garbage; selecting after the per-row
    # lse keeps the forward exact).
    row = (jax.lax.broadcasted_iota(jnp.int32, per_example.shape, 0)
           + pl.program_id(0) * tile_rows)
    per_example = jnp.where(row < n_valid, per_example, 0.0)

    partial = jnp.sum(per_example)                       # this tile's sum

    # lane-dense (1, 128) output row: partial in lane 0, zeros elsewhere.
    lane = jax.lax.broadcasted_iota(jnp.int32, (1, 128), 1)
    out_ref[...] = jnp.where(lane == 0, partial, 0.0)


def _pick_tile_rows(n, c, vmem_limit_bytes):
    """Pick a sublane-aligned batch tile size.

    Live VMEM per step ~= 2x double-buffered (TN, C) input blocks
    + >=1 materialized (TN, C) f32 `scores` temp + small targets/out
    buffers, so the input block is capped at ~vmem_limit/5.  MiB-scale
    blocks (~2-4 MiB) hit >=85% of HBM roofline while keeping the ~0.35 us
    per-step overhead negligible.
    """
    elem_bytes = 4  # block is consumed as f32 inside the kernel
    block_budget = min(4 * 1024 * 1024, vmem_limit_bytes // 5)
    rows = max(8, block_budget // (c * elem_bytes))

    # Guarantee >= 2 grid steps when the batch allows it, so the "parallel"
    # batch axis can shard across both v7x TensorCores (no-op on v5e/v6e).
    half = (n + 1) // 2
    half = max(8, ((half + 7) // 8) * 8)
    rows = min(rows, half)

    rows = max(8, (rows // 8) * 8)                       # sublane-aligned
    return rows


def circle_loss(inputs, targets, scale=16.0, margin=0.3, tile_rows=None,
                stabilize=True, vmem_limit_bytes=32 * 1024 * 1024):
    """inputs: (N, C) float32 or bfloat16 similarity scores; targets: (N,) ints.

    bf16 inputs are read directly (half the HBM traffic); math is f32.
    """
    n, c = inputs.shape
    tn = tile_rows if tile_rows is not None else _pick_tile_rows(
        n, c, vmem_limit_bytes)
    num_tiles = pl.cdiv(n, tn)

    # No jnp.pad: the ragged last block is read (garbage rows) and masked
    # inside the kernel with `row < n_valid`.
    targets_col = targets.astype(jnp.int32).reshape(n, 1)

    kernel = functools.partial(
        _circle_loss_kernel,
        scale=float(scale),
        margin=float(margin),
        n_valid=n,
        tile_rows=tn,
        stabilize=stabilize,
    )

    # TODO(synk): for very large num_classes, add a second ("arbitrary",
    # last-in-grid) axis over C with online-logsumexp scratch accumulators
    # (running max / running sum / tgt_score per row) finalized under
    # pl.when on the last C step, so per-block VMEM is independent of C.
    partials = pl.pallas_call(
        kernel,
        out_shape=jax.ShapeDtypeStruct((num_tiles, 128), jnp.float32),
        grid_spec=pltpu.PrefetchScalarGridSpec(
            num_scalar_prefetch=0,
            grid=(num_tiles,),
            in_specs=[
                pl.BlockSpec((tn, c), lambda i: (i, 0)),
                pl.BlockSpec((tn, 1), lambda i: (i, 0)),
            ],
            out_specs=pl.BlockSpec((1, 128), lambda i: (i, 0)),
        ),
        compiler_params=pltpu.CompilerParams(
            dimension_semantics=("parallel",),
            # Explicit override is required: v5e's default scoped VMEM is
            # only 16 MiB.  32 MiB is safe on v5e/v6e (128 MiB physical) and
            # v7x (64 MiB physical), and _pick_tile_rows budgets the whole
            # working set (double-buffered inputs + scores temp) against it.
            vmem_limit_bytes=vmem_limit_bytes,
        ),
    )(inputs, targets_col)

    # Final mean: tiny reduction + compile-time 1/N constant in the wrapper.
    return jnp.sum(partials) * (1.0 / n)


def _reference(inputs, targets, scale=16.0, margin=0.3):
    # pure-JAX reference for a sanity check
    inputs = inputs.astype(jnp.float32)
    n, c = inputs.shape
    mask = jax.nn.one_hot(targets, c, dtype=inputs.dtype)
    pos_scale = scale * jax.nn.relu(1.0 + margin - inputs)
    neg_scale = scale * jax.nn.relu(inputs + margin)
    scale_matrix = pos_scale * mask + neg_scale * (1.0 - mask)
    scores = (inputs - (1.0 - margin) * mask - margin * (1.0 - mask)) * scale_matrix
    logz = jax.scipy.special.logsumexp(scores, axis=-1)
    tgt = jnp.take_along_axis(scores, targets[:, None], axis=-1)[:, 0]
    return jnp.mean(logz - tgt)


if __name__ == "__main__":
    key = jax.random.PRNGKey(0)
    k1, k2, k3, k4 = jax.random.split(key, 4)

    # Small shapes: batch=8, num_classes=128 (lane-aligned)
    N, C = 8, 128
    inputs = jnp.tanh(jax.random.normal(k1, (N, C), dtype=jnp.float32))
    targets = jax.random.randint(k2, (N,), 0, C, dtype=jnp.int32)

    loss = circle_loss(inputs, targets)
    jax.block_until_ready(loss)
    ref = _reference(inputs, targets)
    assert jnp.allclose(loss, ref, rtol=1e-5, atol=1e-4), (loss, ref)

    # Multi-tile + ragged last block (no pad) with a forced small tile size.
    N2, C2 = 20, 128
    inputs2 = jnp.tanh(jax.random.normal(k3, (N2, C2), dtype=jnp.float32))
    targets2 = jax.random.randint(k4, (N2,), 0, C2, dtype=jnp.int32)

    loss2 = circle_loss(inputs2, targets2, tile_rows=8)
    jax.block_until_ready(loss2)
    ref2 = _reference(inputs2, targets2)
    assert jnp.allclose(loss2, ref2, rtol=1e-5, atol=1e-4), (loss2, ref2)

    # Default heuristic path on the same ragged batch (also exercises the
    # >=2-tile megacore split) + bf16 input path (read-once, half HBM bytes).
    loss3 = circle_loss(inputs2.astype(jnp.bfloat16), targets2,
                        stabilize=False)
    jax.block_until_ready(loss3)
    ref3 = _reference(inputs2.astype(jnp.bfloat16), targets2)
    assert jnp.allclose(loss3, ref3, rtol=1e-2, atol=1e-2), (loss3, ref3)

    print("KERNEL_OK")
</pallas_src>

<mosaic_0001>
module attributes {stable_mosaic.version = 11 : i64} {
  func.func @_circle_loss_kernel(%arg0: i32, %arg1: memref<8x128xf32, #tpu.memory_space<vmem>>, %arg2: memref<8x1xi32, #tpu.memory_space<vmem>>, %arg3: memref<1x128xf32, #tpu.memory_space<vmem>>) attributes {dimension_semantics = [#tpu.dimension_semantics<parallel>], iteration_bounds = array<i64: 1>, scalar_prefetch = 0 : i64, scratch_operands = 0 : i64, tpu.core_type = #tpu.core_type<tc>, window_params = [{transform_indices = @transform_0, window_bounds = array<i64: 8, 128>}, {transform_indices = @transform_1, window_bounds = array<i64: 8, 1>}, {transform_indices = @transform_2, window_bounds = array<i64: 1, 128>}]} {
    %c0 = arith.constant 0 : index
    %c0_0 = arith.constant 0 : index
    %0 = vector.load %arg1[%c0, %c0_0] : memref<8x128xf32, #tpu.memory_space<vmem>>, vector<8x128xf32>
    %c0_1 = arith.constant 0 : index
    %c0_2 = arith.constant 0 : index
    %1 = vector.load %arg2[%c0_1, %c0_2] : memref<8x1xi32, #tpu.memory_space<vmem>>, vector<8x1xi32>
    %2 = tpu.iota {dimensions = array<i32: 1>} : vector<8x128xi32>
    %3 = vector.broadcast %1 : vector<8x1xi32> to vector<8x128xi32>
    %4 = arith.cmpi eq, %2, %3 : vector<8x128xi32>
    %cst = arith.constant 1.300000e+00 : f32
    %5 = vector.broadcast %cst : f32 to vector<8x128xf32>
    %6 = arith.subf %5, %0 : vector<8x128xf32>
    %cst_3 = arith.constant 0.000000e+00 : f32
    %7 = vector.broadcast %cst_3 : f32 to vector<8x128xf32>
    %8 = arith.maximumf %6, %7 : vector<8x128xf32>
    %cst_4 = arith.constant 3.000000e-01 : f32
    %9 = vector.broadcast %cst_4 : f32 to vector<8x128xf32>
    %10 = arith.addf %0, %9 : vector<8x128xf32>
    %cst_5 = arith.constant 0.000000e+00 : f32
    %11 = vector.broadcast %cst_5 : f32 to vector<8x128xf32>
    %12 = arith.maximumf %10, %11 : vector<8x128xf32>
    %cst_6 = arith.constant 0.699999988 : f32
    %13 = vector.broadcast %cst_6 : f32 to vector<8x128xf32>
    %14 = arith.subf %0, %13 : vector<8x128xf32>
    %15 = arith.mulf %14, %8 : vector<8x128xf32>
    %cst_7 = arith.constant 3.000000e-01 : f32
    %16 = vector.broadcast %cst_7 : f32 to vector<8x128xf32>
    %17 = arith.subf %0, %16 : vector<8x128xf32>
    %18 = arith.mulf %17, %12 : vector<8x128xf32>
    %19 = arith.select %4, %15, %18 : vector<8x128xi1>, vector<8x128xf32>
    %cst_8 = arith.constant 1.600000e+01 : f32
    %20 = vector.broadcast %cst_8 : f32 to vector<8x128xf32>
    %21 = arith.mulf %20, %19 : vector<8x128xf32>
    %cst_9 = arith.constant dense<0xFF800000> : vector<8xf32>
    %22 = vector.multi_reduction <maximumf>, %21, %cst_9 [1] : vector<8x128xf32> to vector<8xf32>
    %23 = vector.shape_cast %22 : vector<8xf32> to vector<8x1xf32>
    %24 = vector.broadcast %23 : vector<8x1xf32> to vector<8x128xf32>
    %25 = arith.subf %21, %24 : vector<8x128xf32>
    %26 = math.exp %25 : vector<8x128xf32>
    %cst_10 = arith.constant dense<0.000000e+00> : vector<8xf32>
    %27 = vector.multi_reduction <add>, %26, %cst_10 [1] : vector<8x128xf32> to vector<8xf32>
    %28 = vector.shape_cast %27 : vector<8xf32> to vector<8x1xf32>
    %29 = math.log %28 : vector<8x1xf32>
    %30 = arith.addf %23, %29 : vector<8x1xf32>
    %cst_11 = arith.constant 0.000000e+00 : f32
    %31 = vector.broadcast %cst_11 : f32 to vector<8x128xf32>
    %32 = arith.select %4, %21, %31 : vector<8x128xi1>, vector<8x128xf32>
    %cst_12 = arith.constant dense<0.000000e+00> : vector<8xf32>
    %33 = vector.multi_reduction <add>, %32, %cst_12 [1] : vector<8x128xf32> to vector<8xf32>
    %34 = vector.shape_cast %33 : vector<8xf32> to vector<8x1xf32>
    %35 = arith.subf %30, %34 : vector<8x1xf32>
    %36 = tpu.iota {dimensions = array<i32: 0>} : vector<8x1xi32>
    %c8_i32 = arith.constant 8 : i32
    %37 = arith.muli %arg0, %c8_i32 : i32
    %38 = vector.broadcast %37 : i32 to vector<8x1xi32>
    %39 = arith.addi %36, %38 : vector<8x1xi32>
    %c8_i32_13 = arith.constant 8 : i32
    %40 = vector.broadcast %c8_i32_13 : i32 to vector<8x1xi32>
    %41 = arith.cmpi slt, %39, %40 : vector<8x1xi32>
    %cst_14 = arith.constant 0.000000e+00 : f32
    %42 = vector.broadcast %cst_14 : f32 to vector<8x1xf32>
    %43 = arith.select %41, %35, %42 : vector<8x1xi1>, vector<8x1xf32>
    %44 = vector.shape_cast %43 : vector<8x1xf32> to vector<1x8x1xf32>
    %cst_15 = arith.constant dense<0.000000e+00> : vector<1xf32>
    %45 = vector.multi_reduction <add>, %44, %cst_15 [1, 2] : vector<1x8x1xf32> to vector<1xf32>
    %46 = vector.shape_cast %45 : vector<1xf32> to vector<1x1x1xf32>
    %47 = vector.extract %46[0, 0, 0] : f32 from vector<1x1x1xf32>
    %48 = tpu.iota {dimensions = array<i32: 1>} : vector<1x128xi32>
    %c0_i32 = arith.constant 0 : i32
    %49 = vector.broadcast %c0_i32 : i32 to vector<1x128xi32>
    %50 = arith.cmpi eq, %48, %49 : vector<1x128xi32>
    %cst_16 = arith.constant 0.000000e+00 : f32
    %51 = vector.broadcast %47 : f32 to vector<1x128xf32>
    %52 = vector.broadcast %cst_16 : f32 to vector<1x128xf32>
    %53 = arith.select %50, %51, %52 : vector<1x128xi1>, vector<1x128xf32>
    %c0_17 = arith.constant 0 : index
    %c0_18 = arith.constant 0 : index
    %54 = vector.load %arg3[%c0_17, %c0_18] : memref<1x128xf32, #tpu.memory_space<vmem>>, vector<1x128xf32>
    tpu.vector_store %arg3[%c0_17, %c0_18], %53 {strides = array<i32>} : memref<1x128xf32, #tpu.memory_space<vmem>>, vector<1x128xf32>,
    return
  }
  func.func @transform_0(%arg0: i32) -> (i32, i32) {
    %c0_i32 = arith.constant 0 : i32
    %c0_i32_0 = arith.constant 0 : i32
    return %arg0, %c0_i32 : i32, i32
  }
  func.func @transform_1(%arg0: i32) -> (i32, i32) {
    %c0_i32 = arith.constant 0 : i32
    %c0_i32_0 = arith.constant 0 : i32
    return %arg0, %c0_i32 : i32, i32
  }
  func.func @transform_2(%arg0: i32) -> (i32, i32) {
    %c0_i32 = arith.constant 0 : i32
    %c0_i32_0 = arith.constant 0 : i32
    return %arg0, %c0_i32 : i32, i32
  }
}

</mosaic_0001>

<bundles_post_ra>
// kernel: tpu_custom_call.1
= control target key start
LH: loop header
LB: loop body
LE: loop exit
PB: predicated region body
PF: predicated region fallthrough
CT: control target
= control target key end

     0   :  { %s139_s0 = inlined_call_operand.vmem [shape: f32[8,128], index: 0, kind: input, shape index: {}]   ;;  %s140_s1 = inlined_call_operand.vmem [shape: s32[8,1], index: 1, kind: input, shape index: {}]   ;;  %s141_s2 = inlined_call_operand.hbm [shape: f32[1,128], index: 2, kind: output, shape index: {}]  }
   0x1   :  { %v13_v0 = vld [vmem:[%s140_s1] sm:$0xff] }
   0x2   :  { %7 = vsyncpa [#allocation3], 0  ;;  %v113_v1 = vmov 0   ;;  %v12_v2 = vld [vmem:[%s139_s0] sm:$0xff]  ;;  %v14_v5 = vlaneseq  ;;  %vm51_vm1 = vcmask 7168   ;;  %s114_s0 = smov [#allocation2]  }
   0x3   :  { %86 = vset.pattern.permute.xlu0 %v113_v1  ;;  %v20_v3 = vsub.f32 1.3, %v12_v2  ;;  %v22_v4 = vadd.f32 0.3, %v12_v2  ;;  %v80_v8 = vadd.f32 -0.7, %v12_v2 }
   0x4   :  { %17 = vperm.xlu0 %86, %v13_v0   ;;  %v81_v9 = vadd.f32 -0.3, %v12_v2  ;;  %v15_v10 = vand.u32 127, %v14_v5  ;;  %s72_s1 = sshll.u32 %s114_s0, 4  ;;  %s73_s1 = int_to_ptr.vmem [resolvable:$true] %s72_s1 }
   0x5   :  { %v21_v6 = vmax.f32 %v20_v3, 0.0  ;;  %v23_v7 = vmax.f32 %v22_v4, 0.0  ;;  %s91_s14 = scalar_lea.vmem %s73_s1, 16  ;;  %s95_s15 = scalar_lea.vmem %s73_s1, 32 }
   0x6   :  { %vm62_vm2 = vcmp.eq.s32.totalorder %v15_v10, 0  ;;  %p92_p0 = scmp.ne.s32.totalorder %s73_s1, %s91_s14  ;;  %p96_p1 = scmp.lt.s32.totalorder %s73_s1, %s73_s1 }
   0x7   :  { %v25_v11 = vmul.f32 %v80_v8, %v21_v6  ;;  %v27_v12 = vmul.f32 %v81_v9, %v23_v7  ;;  %p97_p2 = scmp.lt.s32.totalorder %s95_s15, %s91_s14 }
   0x9   :  { %p98_p3 = por %p97_p2, %p96_p1 }
   0xb   :  { %p99_p4 = pnand %p98_p3, %p92_p0 }
  0x7f   :  { %v18_v13 = vpop.permute.xlu0 %17 }
  0x80   :  { %vm19_vm0 = vcmp.eq.s32.totalorder %v15_v10, %v18_v13 }
  0x81   :  { %v28_v14 = vsel %vm19_vm0, %v25_v11, %v27_v12 }
  0x82   :  { %v29_v15 = vmul.f32 16.0, %v28_v14 }
  0x84   :  { %30 = vmax.xlane.f32.xlu0 %v29_v15  ;;  %v40_v20 = vsel %vm19_vm0, %v29_v15, 0.0 }
 0x10d   :  { %v31_v16 = vpop.xlane.xlu0 %30 }
 0x10e   :  { %v32_v17 = vsub.f32 %v29_v15, %v31_v16 }
 0x110   :  { %v33_v18 = vmul.f32 1.442695, %v32_v17 }
 0x112   :  { %87 = vpow2.f32 %v33_v18 }
 0x11f   :  { %v88_v19 = vpop.eup %87 }
 0x120   :  { %35 = vadd.xlane.f32.xlu1 %v88_v19 }
 0x124   :  { %41 = vadd.xlane.f32.xlu1 %v40_v20 }
 0x1a9   :  { %v36_v21 = vpop.xlane.xlu1 %35 }
 0x1aa   :  { %89 = vlog2.f32 %v36_v21 }
 0x1ad   :  { %v42_v25 = vpop.xlane.xlu1 %41 }
 0x1b7   :  { %v90_v22 = vpop.eup %89 }
 0x1b8   :  { %v38_v23 = vmul.f32 0.6931472, %v90_v22 }
 0x1ba   :  { %v39_v24 = vadd.f32 %v38_v23, %v31_v16 }
 0x1bc   :  { %v43_v26 = vsub.f32 %v39_v24, %v42_v25 }
 0x1be   :  { %v52_v27 = vsel %vm51_vm1, %v43_v26, 0.0 }
 0x1bf   :  { %53 = vadd.xlane.f32.xlu1 %v52_v27 }
 0x248   :  { %v54_v28 = vpop.xlane.xlu1 %53 }
 0x249   :  { %v55_v29 = vrot.slane %v54_v28, 4 }
 0x24b   :  { %v56_v30 = vadd.f32 %v55_v29, %v54_v28 }
 0x24d   :  { %v57_v31 = vrot.slane %v56_v30, 2 }
 0x24f   :  { %v58_v32 = vadd.f32 %v57_v31, %v56_v30 }
 0x251   :  { %v59_v33 = vrot.slane %v58_v32, 1 }
 0x253   :  { %v60_v34 = vadd.f32 %v59_v33, %v58_v32 }
 0x255   :  { %82 = vpush %v60_v34 }
 0x286   :  { %s83_s13 = spop %82 }
 0x287   :  { %v63_v35 = vstv %s83_s13 }
 0x288   :  { %v64_v36 = vsel %vm62_vm2, %v63_v35, 0.0 }
 0x289   :  { %65 = vst [vmem:[#allocation2] sm:$0x1] %v64_v36 }
 0x28a   :  { %102 = shalt.err (!%p99_p4)
}
 0x28b   :  { %75 = dma.vmem_to_hbm [thread:$0]  %s73_s1, 16, %s141_s2, [#allocation3]  }
 0x28c   :  { %111 = dma.done.wait [#allocation3], 16  }
 0x28d   :  { %112 = vsyncadd [#allocation3], 4294967280 }
 0x28e   :  { %79 = vsyncpa [#allocation3], 1 }

</bundles_post_ra>
